<compile_context>
chip_gen: v7x
topology: tpu7x:2x2x1
jax: 0.10.0
libtpu: 0.0.40
codegen_flags: <defaults>
</compile_context>

<pallas_src>
import functools

import jax
import jax.numpy as jnp
from jax.experimental import pallas as pl
from jax.experimental.pallas import tpu as pltpu


def _radial_pad_kernel(x_ref, o_ref, *, pad, H, W):
    p = pad
    Ho, Wo = H + 2 * p, W + 2 * p
    tb = x_ref.shape[0]                  # static block batch size

    x = x_ref[...]                       # (TB, H, W)

    # Bulk interior: one big store, no intermediate copies.
    o_ref[:, p:p + H, p:p + W] = x

    # Circular (wrap) halo along W for the interior rows.
    o_ref[:, p:p + H, 0:p] = x[:, :, W - p:W]        # left  <- last p columns
    o_ref[:, p:p + H, W + p:Wo] = x[:, :, 0:p]       # right <- first p columns

    # Replicate halo along H (rows 0 and H-1), including the wrapped corners.
    top = x[:, 0:1, :]                   # (TB, 1, W)
    bot = x[:, H - 1:H, :]               # (TB, 1, W)

    o_ref[:, 0:p, p:p + W] = jnp.broadcast_to(top, (tb, p, W))
    o_ref[:, 0:p, 0:p] = jnp.broadcast_to(top[:, :, W - p:W], (tb, p, p))
    o_ref[:, 0:p, W + p:Wo] = jnp.broadcast_to(top[:, :, 0:p], (tb, p, p))

    o_ref[:, H + p:Ho, p:p + W] = jnp.broadcast_to(bot, (tb, p, W))
    o_ref[:, H + p:Ho, 0:p] = jnp.broadcast_to(bot[:, :, W - p:W], (tb, p, p))
    o_ref[:, H + p:Ho, W + p:Wo] = jnp.broadcast_to(bot[:, :, 0:p], (tb, p, p))


def _choose_tile_batch(nc, h, w, ho, wo, itemsize,
                       budget_bytes=24 * 1024 * 1024):
    """Largest TB whose double-buffered (in + out) footprint fits the budget.

    24 MiB is conservative for v7x's 64 MiB physical VMEM and leaves v5e/v6e
    (128 MiB) with plenty of headroom while still giving multi-MiB tiles.
    """
    per_image = (h * w + ho * wo) * itemsize
    tb = max(1, budget_bytes // (2 * per_image))
    return int(min(tb, nc))


def radial_pad(x, padding):
    """x: (N, C, H, W) array. Returns (N, C, H+2p, W+2p)."""
    N, C, H, W = x.shape
    p = int(padding)
    if p == 0:
        return x
    # PyTorch circular pad also requires padding <= input size along that dim.
    assert 0 < p <= W, f"circular padding requires 0 < padding <= W (p={p}, W={W})"

    Ho, Wo = H + 2 * p, W + 2 * p
    NC = N * C
    itemsize = jnp.dtype(x.dtype).itemsize

    TB = _choose_tile_batch(NC, H, W, Ho, Wo, itemsize)
    grid = (pl.cdiv(NC, TB),)

    # Explicit VMEM budget: double-buffered (in + out) block plus ~50% headroom,
    # clamped so it is always safe on v7x's 64 MiB physical VMEM.
    footprint = 2 * TB * (H * W + Ho * Wo) * itemsize
    vmem_limit = int(min(max(int(footprint * 1.5), 8 * 1024 * 1024),
                         48 * 1024 * 1024))

    in_bytes = NC * H * W * itemsize
    out_bytes = NC * Ho * Wo * itemsize

    x_flat = x.reshape(NC, H, W)

    kernel = functools.partial(_radial_pad_kernel, pad=p, H=H, W=W)

    # TODO(synk): if production H/W stay tiny (e.g. 16x16) and neighboring ops
    # can consume it, a (H, W, NC)-major layout with NC on the lane dim would
    # give fully lane-dense stores; skipped here to avoid an extra HBM
    # transpose pass in the wrapper.
    out_flat = pl.pallas_call(
        kernel,
        out_shape=jax.ShapeDtypeStruct((NC, Ho, Wo), x.dtype),
        grid_spec=pltpu.PrefetchScalarGridSpec(
            num_scalar_prefetch=0,
            grid=grid,
            in_specs=[pl.BlockSpec((TB, H, W), lambda i: (i, 0, 0))],
            out_specs=pl.BlockSpec((TB, Ho, Wo), lambda i: (i, 0, 0)),
        ),
        compiler_params=pltpu.CompilerParams(
            dimension_semantics=("parallel",),
            vmem_limit_bytes=vmem_limit),
        cost_estimate=pl.CostEstimate(
            flops=0, transcendentals=0,
            bytes_accessed=in_bytes + out_bytes),
    )(x_flat)

    return out_flat.reshape(N, C, Ho, Wo)


def radial_pad_ref(x, padding):
    """Pure-JAX reference mirroring the PyTorch module."""
    p = int(padding)
    # replicate along H (axis -2)
    x1 = jnp.pad(x, ((0, 0), (0, 0), (p, p), (0, 0)), mode='edge')
    # circular along W (axis -1)
    x2 = jnp.pad(x1, ((0, 0), (0, 0), (0, 0), (p, p)), mode='wrap')
    return x2


if __name__ == "__main__":
    key = jax.random.PRNGKey(0)
    N, C, H, W = 2, 4, 16, 16
    padding = 2  # RadialPad(padding=2)

    x = jax.random.normal(key, (N, C, H, W), dtype=jnp.float32)

    out = radial_pad(x, padding)
    out = jax.block_until_ready(out)

    ref = radial_pad_ref(x, padding)
    assert out.shape == (N, C, H + 2 * padding, W + 2 * padding), out.shape
    assert jnp.allclose(out, ref), "mismatch vs reference padding"

    print("KERNEL_OK")
</pallas_src>

<mosaic_0001>
module attributes {stable_mosaic.version = 11 : i64} {
  func.func @_radial_pad_kernel(%arg0: i32, %arg1: memref<8x16x16xf32, #tpu.memory_space<vmem>>, %arg2: memref<8x20x20xf32, #tpu.memory_space<vmem>>) attributes {dimension_semantics = [#tpu.dimension_semantics<parallel>], iteration_bounds = array<i64: 1>, scalar_prefetch = 0 : i64, scratch_operands = 0 : i64, tpu.core_type = #tpu.core_type<tc>, window_params = [{transform_indices = @transform_0, window_bounds = array<i64: 8, 16, 16>}, {transform_indices = @transform_1, window_bounds = array<i64: 8, 20, 20>}]} {
    %c0 = arith.constant 0 : index
    %c0_0 = arith.constant 0 : index
    %c0_1 = arith.constant 0 : index
    %0 = vector.load %arg1[%c0, %c0_0, %c0_1] : memref<8x16x16xf32, #tpu.memory_space<vmem>>, vector<8x16x16xf32>
    %c0_2 = arith.constant 0 : index
    %c2 = arith.constant 2 : index
    %c2_3 = arith.constant 2 : index
    %1 = vector.load %arg2[%c0_2, %c2, %c2_3] : memref<8x20x20xf32, #tpu.memory_space<vmem>>, vector<8x16x16xf32>
    tpu.vector_store %arg2[%c0_2, %c2, %c2_3], %0 {strides = array<i32>} : memref<8x20x20xf32, #tpu.memory_space<vmem>>, vector<8x16x16xf32>,
    %2 = vector.extract_strided_slice %0 {offsets = [0, 0, 14], sizes = [8, 16, 2], strides = [1, 1, 1]} : vector<8x16x16xf32> to vector<8x16x2xf32>
    %c0_4 = arith.constant 0 : index
    %c2_5 = arith.constant 2 : index
    %c0_6 = arith.constant 0 : index
    %3 = vector.load %arg2[%c0_4, %c2_5, %c0_6] : memref<8x20x20xf32, #tpu.memory_space<vmem>>, vector<8x16x2xf32>
    tpu.vector_store %arg2[%c0_4, %c2_5, %c0_6], %2 {strides = array<i32>} : memref<8x20x20xf32, #tpu.memory_space<vmem>>, vector<8x16x2xf32>,
    %4 = vector.extract_strided_slice %0 {offsets = [0, 0, 0], sizes = [8, 16, 2], strides = [1, 1, 1]} : vector<8x16x16xf32> to vector<8x16x2xf32>
    %c0_7 = arith.constant 0 : index
    %c2_8 = arith.constant 2 : index
    %c18 = arith.constant 18 : index
    %5 = vector.load %arg2[%c0_7, %c2_8, %c18] : memref<8x20x20xf32, #tpu.memory_space<vmem>>, vector<8x16x2xf32>
    tpu.vector_store %arg2[%c0_7, %c2_8, %c18], %4 {strides = array<i32>} : memref<8x20x20xf32, #tpu.memory_space<vmem>>, vector<8x16x2xf32>,
    %6 = vector.extract_strided_slice %0 {offsets = [0, 0, 0], sizes = [8, 1, 16], strides = [1, 1, 1]} : vector<8x16x16xf32> to vector<8x1x16xf32>
    %7 = vector.extract_strided_slice %0 {offsets = [0, 15, 0], sizes = [8, 1, 16], strides = [1, 1, 1]} : vector<8x16x16xf32> to vector<8x1x16xf32>
    %8 = vector.shape_cast %6 : vector<8x1x16xf32> to vector<8x1x16xf32>
    %9 = vector.broadcast %8 : vector<8x1x16xf32> to vector<8x2x16xf32>
    %c0_9 = arith.constant 0 : index
    %c0_10 = arith.constant 0 : index
    %c2_11 = arith.constant 2 : index
    %10 = vector.load %arg2[%c0_9, %c0_10, %c2_11] : memref<8x20x20xf32, #tpu.memory_space<vmem>>, vector<8x2x16xf32>
    tpu.vector_store %arg2[%c0_9, %c0_10, %c2_11], %9 {strides = array<i32>} : memref<8x20x20xf32, #tpu.memory_space<vmem>>, vector<8x2x16xf32>,
    %11 = vector.extract_strided_slice %6 {offsets = [0, 0, 14], sizes = [8, 1, 2], strides = [1, 1, 1]} : vector<8x1x16xf32> to vector<8x1x2xf32>
    %12 = vector.shape_cast %11 : vector<8x1x2xf32> to vector<8x1x2xf32>
    %13 = vector.broadcast %12 : vector<8x1x2xf32> to vector<8x2x2xf32>
    %c0_12 = arith.constant 0 : index
    %c0_13 = arith.constant 0 : index
    %c0_14 = arith.constant 0 : index
    %14 = vector.load %arg2[%c0_12, %c0_13, %c0_14] : memref<8x20x20xf32, #tpu.memory_space<vmem>>, vector<8x2x2xf32>
    tpu.vector_store %arg2[%c0_12, %c0_13, %c0_14], %13 {strides = array<i32>} : memref<8x20x20xf32, #tpu.memory_space<vmem>>, vector<8x2x2xf32>,
    %15 = vector.extract_strided_slice %6 {offsets = [0, 0, 0], sizes = [8, 1, 2], strides = [1, 1, 1]} : vector<8x1x16xf32> to vector<8x1x2xf32>
    %16 = vector.shape_cast %15 : vector<8x1x2xf32> to vector<8x1x2xf32>
    %17 = vector.broadcast %16 : vector<8x1x2xf32> to vector<8x2x2xf32>
    %c0_15 = arith.constant 0 : index
    %c0_16 = arith.constant 0 : index
    %c18_17 = arith.constant 18 : index
    %18 = vector.load %arg2[%c0_15, %c0_16, %c18_17] : memref<8x20x20xf32, #tpu.memory_space<vmem>>, vector<8x2x2xf32>
    tpu.vector_store %arg2[%c0_15, %c0_16, %c18_17], %17 {strides = array<i32>} : memref<8x20x20xf32, #tpu.memory_space<vmem>>, vector<8x2x2xf32>,
    %19 = vector.shape_cast %7 : vector<8x1x16xf32> to vector<8x1x16xf32>
    %20 = vector.broadcast %19 : vector<8x1x16xf32> to vector<8x2x16xf32>
    %c0_18 = arith.constant 0 : index
    %c18_19 = arith.constant 18 : index
    %c2_20 = arith.constant 2 : index
    %21 = vector.load %arg2[%c0_18, %c18_19, %c2_20] : memref<8x20x20xf32, #tpu.memory_space<vmem>>, vector<8x2x16xf32>
    tpu.vector_store %arg2[%c0_18, %c18_19, %c2_20], %20 {strides = array<i32>} : memref<8x20x20xf32, #tpu.memory_space<vmem>>, vector<8x2x16xf32>,
    %22 = vector.extract_strided_slice %7 {offsets = [0, 0, 14], sizes = [8, 1, 2], strides = [1, 1, 1]} : vector<8x1x16xf32> to vector<8x1x2xf32>
    %23 = vector.shape_cast %22 : vector<8x1x2xf32> to vector<8x1x2xf32>
    %24 = vector.broadcast %23 : vector<8x1x2xf32> to vector<8x2x2xf32>
    %c0_21 = arith.constant 0 : index
    %c18_22 = arith.constant 18 : index
    %c0_23 = arith.constant 0 : index
    %25 = vector.load %arg2[%c0_21, %c18_22, %c0_23] : memref<8x20x20xf32, #tpu.memory_space<vmem>>, vector<8x2x2xf32>
    tpu.vector_store %arg2[%c0_21, %c18_22, %c0_23], %24 {strides = array<i32>} : memref<8x20x20xf32, #tpu.memory_space<vmem>>, vector<8x2x2xf32>,
    %26 = vector.extract_strided_slice %7 {offsets = [0, 0, 0], sizes = [8, 1, 2], strides = [1, 1, 1]} : vector<8x1x16xf32> to vector<8x1x2xf32>
    %27 = vector.shape_cast %26 : vector<8x1x2xf32> to vector<8x1x2xf32>
    %28 = vector.broadcast %27 : vector<8x1x2xf32> to vector<8x2x2xf32>
    %c0_24 = arith.constant 0 : index
    %c18_25 = arith.constant 18 : index
    %c18_26 = arith.constant 18 : index
    %29 = vector.load %arg2[%c0_24, %c18_25, %c18_26] : memref<8x20x20xf32, #tpu.memory_space<vmem>>, vector<8x2x2xf32>
    tpu.vector_store %arg2[%c0_24, %c18_25, %c18_26], %28 {strides = array<i32>} : memref<8x20x20xf32, #tpu.memory_space<vmem>>, vector<8x2x2xf32>,
    return
  }
  func.func @transform_0(%arg0: i32) -> (i32, i32, i32) {
    %c0_i32 = arith.constant 0 : i32
    %c0_i32_0 = arith.constant 0 : i32
    %c0_i32_1 = arith.constant 0 : i32
    return %arg0, %c0_i32, %c0_i32_0 : i32, i32, i32
  }
  func.func @transform_1(%arg0: i32) -> (i32, i32, i32) {
    %c0_i32 = arith.constant 0 : i32
    %c0_i32_0 = arith.constant 0 : i32
    %c0_i32_1 = arith.constant 0 : i32
    return %arg0, %c0_i32, %c0_i32_0 : i32, i32, i32
  }
}

</mosaic_0001>

<bundles_post_ra>
// kernel: tpu_custom_call.1
= control target key start
LH: loop header
LB: loop body
LE: loop exit
PB: predicated region body
PF: predicated region fallthrough
CT: control target
= control target key end

     0   :  { %6 = vsyncpa [#allocation3], 0  ;;  %s559_s6 = smov [#allocation2]   ;;  %s1203_s0 = inlined_call_operand.hbm [shape: f32[8,16,16], index: 0, kind: input, shape index: {}]   ;;  %s1204_s1 = inlined_call_operand.vmem [shape: f32[8,20,20], index: 1, kind: output, shape index: {}]  }
   0x1   :  { %s12_s7 = sshll.u32 %s559_s6, 4  ;;  %s535_s10 = scalar_lea.hbm %s1203_s0, 2048  ;;  %s13_s7 = int_to_ptr.vmem [resolvable:$true] %s12_s7 }
   0x2   :  { %p536_p0 = scmp.ne.s32.totalorder %s1203_s0, %s535_s10  ;;  %p539_p1 = scmp.lt.u32.totalorder %s535_s10, %s1203_s0 }
   0x4   :  { %p541_p2 = pnand %p539_p1, %p536_p0 }
   0x6   :  { %544 = shalt.err (!%p541_p2)
}
   0x7   :  { %s545_s15 = scalar_lea.vmem %s13_s7, 2048  ;;  %p550_p4 = scmp.lt.s32.totalorder %s13_s7, %s13_s7 }
   0x8   :  { %p546_p3 = scmp.ne.s32.totalorder %s13_s7, %s545_s15  ;;  %p551_p5 = scmp.lt.s32.totalorder %s545_s15, %s545_s15 }
   0xa   :  { %p552_p6 = por %p551_p5, %p550_p4 }
   0xc   :  { %p553_p7 = pnand %p552_p6, %p546_p3 }
   0xe   :  { %556 = shalt.err (!%p553_p7)
}
   0xf   :  { %s560_s16 = smov 128   ;;  %s561_s17 = smov 8  }
  0x10   :  { %18 = dma.hbm_to_vmem [thread:$0]  %s1203_s0, 2048, %s13_s7, [#allocation3], %s560_s16, %s560_s16, %s561_s17  }
  0x11   :  { %557 = dma.done.wait [#allocation3], 2048  }
  0x12   :  { %558 = vsyncadd [#allocation3], 4294965248  ;;  %v587_v0 = vld [vmem:[#allocation2 + $0x10] sm:$0xff]  ;;  %v589_v1 = vld [vmem:[#allocation2] sm:$0xff]  ;;  %s562_s20 = smov 2   ;;  %s563_s0 = smov 114   ;;  %v249_v16 = vlaneseq }
  0x13   :  { %58 = vrot.lane.b32.xlu1 %v587_v0, %s562_s20  ;;  %54 = vrot.lane.b32.xlu0 %v589_v1, %s562_s20  ;;  %v595_v2 = vld [vmem:[#allocation2 + $0x18] sm:$0xff]  ;;  %v597_v3 = vld [vmem:[#allocation2 + $0x8] sm:$0xff]  ;;  %v605_v5 = vld [vmem:[#allocation2 + $0x20] sm:$0xff]  ;;  %s564_s21 = smov 18   ;;  %vm102_vm0 = vcmask 146448   ;;  %vm167_vm1 = vcmask 15360  }
  0x14   :  { %v603_v4 = vld [vmem:[#allocation2 + $0x28] sm:$0xff]  ;;  %v611_v6 = vld [vmem:[#allocation2 + $0x38] sm:$0xff]  ;;  %v28_v7 = vld [vmem:[#allocation2 + $0x30] sm:$0xff]  ;;  %v250_v17 = vshrl.u32 %v249_v16, 7  ;;  %vm232_vm2 = vcmask 162960   ;;  %vm313_vm3 = vcmask 140304  }
  0x15   :  { %v616_v8 = vld [vmem:[#allocation2 + $0x48] sm:$0xff]  ;;  %v30_v9 = vld [vmem:[#allocation2 + $0x40] sm:$0xff]  ;;  %v621_v10 = vld [vmem:[#allocation2 + $0x58] sm:$0xff]  ;;  %vm346_vm4 = vcmask 9216   ;;  %vm379_vm5 = vcmask 156816  }
  0x16   :  { %v32_v11 = vld [vmem:[#allocation2 + $0x50] sm:$0xff]  ;;  %v626_v12 = vld [vmem:[#allocation2 + $0x68] sm:$0xff]  ;;  %v34_v13 = vld [vmem:[#allocation2 + $0x60] sm:$0xff]  ;;  %v251_v18 = vsub.s32 0, %v250_v17  ;;  %v390_v33 = vsub.s32 7, %v250_v17 }
  0x17   :  { %60 = vrot.lane.b32.xlu1 %v595_v2, %s562_s20  ;;  %56 = vrot.lane.b32.xlu0 %v597_v3, %s562_s20  ;;  %v631_v14 = vld [vmem:[#allocation2 + $0x78] sm:$0xff]  ;;  %v36_v15 = vld [vmem:[#allocation2 + $0x70] sm:$0xff] }
  0x18   :  { %v256_v19 = vrot.slane %v587_v0, %v251_v18  ;;  %v252_v20 = vrot.slane %v589_v1, %v251_v18  ;;  %v694_v21 = vrot.slane %v28_v7, %v251_v18  ;;  %v697_v22 = vrot.slane %v605_v5, %v251_v18 }
  0x19   :  { %v703_v23 = vrot.slane %v32_v11, %v251_v18  ;;  %v705_v24 = vrot.slane %v30_v9, %v251_v18  ;;  %v711_v25 = vrot.slane %v36_v15, %v251_v18  ;;  %v713_v26 = vrot.slane %v34_v13, %v251_v18 }
  0x1a   :  { %v768_v36 = vrot.slane %v595_v2, %v390_v33  ;;  %v771_v37 = vrot.slane %v597_v3, %v390_v33  ;;  %v786_v40 = vrot.slane %v611_v6, %v390_v33  ;;  %v789_v41 = vrot.slane %v603_v4, %v390_v33 }
  0x1b   :  { %64 = vrot.lane.b32.xlu1 %v603_v4, %s562_s20  ;;  %62 = vrot.lane.b32.xlu0 %v605_v5, %s562_s20  ;;  %v804_v44 = vrot.slane %v621_v10, %v390_v33  ;;  %v807_v45 = vrot.slane %v616_v8, %v390_v33  ;;  %v822_v48 = vrot.slane %v631_v14, %v390_v33 }
  0x1c   :  { %v825_v49 = vrot.slane %v626_v12, %v390_v33 }
  0x1f   :  { %68 = vrot.lane.b32.xlu1 %v611_v6, %s562_s20  ;;  %66 = vrot.lane.b32.xlu0 %v28_v7, %s562_s20 }
  0x23   :  { %72 = vrot.lane.b32.xlu1 %v616_v8, %s562_s20  ;;  %70 = vrot.lane.b32.xlu0 %v30_v9, %s562_s20 }
  0x27   :  { %76 = vrot.lane.b32.xlu1 %v621_v10, %s562_s20  ;;  %74 = vrot.lane.b32.xlu0 %v32_v11, %s562_s20 }
  0x2b   :  { %80 = vrot.lane.b32.xlu1 %v626_v12, %s562_s20  ;;  %78 = vrot.lane.b32.xlu0 %v34_v13, %s562_s20 }
  0x2f   :  { %84 = vrot.lane.b32.xlu1 %v631_v14, %s562_s20  ;;  %82 = vrot.lane.b32.xlu0 %v36_v15, %s562_s20 }
  0x33   :  { %121 = vrot.lane.b32.xlu1 %v597_v3, %s563_s0  ;;  %119 = vrot.lane.b32.xlu0 %v589_v1, %s563_s0 }
  0x37   :  { %125 = vrot.lane.b32.xlu1 %v595_v2, %s563_s0  ;;  %123 = vrot.lane.b32.xlu0 %v587_v0, %s563_s0 }
  0x3b   :  { %129 = vrot.lane.b32.xlu1 %v603_v4, %s563_s0  ;;  %127 = vrot.lane.b32.xlu0 %v605_v5, %s563_s0 }
  0x3f   :  { %133 = vrot.lane.b32.xlu1 %v611_v6, %s563_s0  ;;  %131 = vrot.lane.b32.xlu0 %v28_v7, %s563_s0 }
  0x43   :  { %137 = vrot.lane.b32.xlu1 %v616_v8, %s563_s0  ;;  %135 = vrot.lane.b32.xlu0 %v30_v9, %s563_s0 }
  0x47   :  { %141 = vrot.lane.b32.xlu1 %v621_v10, %s563_s0  ;;  %139 = vrot.lane.b32.xlu0 %v32_v11, %s563_s0 }
  0x4b   :  { %145 = vrot.lane.b32.xlu1 %v626_v12, %s563_s0  ;;  %143 = vrot.lane.b32.xlu0 %v34_v13, %s563_s0 }
  0x4f   :  { %149 = vrot.lane.b32.xlu1 %v631_v14, %s563_s0  ;;  %147 = vrot.lane.b32.xlu0 %v36_v15, %s563_s0 }
  0x53   :  { %186 = vrot.lane.b32.xlu1 %v597_v3, %s564_s21  ;;  %184 = vrot.lane.b32.xlu0 %v589_v1, %s564_s21 }
  0x57   :  { %190 = vrot.lane.b32.xlu1 %v595_v2, %s564_s21  ;;  %188 = vrot.lane.b32.xlu0 %v587_v0, %s564_s21 }
  0x5b   :  { %194 = vrot.lane.b32.xlu1 %v603_v4, %s564_s21  ;;  %192 = vrot.lane.b32.xlu0 %v605_v5, %s564_s21 }
  0x5f   :  { %198 = vrot.lane.b32.xlu1 %v611_v6, %s564_s21  ;;  %196 = vrot.lane.b32.xlu0 %v28_v7, %s564_s21 }
  0x63   :  { %202 = vrot.lane.b32.xlu1 %v616_v8, %s564_s21  ;;  %200 = vrot.lane.b32.xlu0 %v30_v9, %s564_s21 }
  0x67   :  { %206 = vrot.lane.b32.xlu1 %v621_v10, %s564_s21  ;;  %204 = vrot.lane.b32.xlu0 %v32_v11, %s564_s21 }
  0x6b   :  { %210 = vrot.lane.b32.xlu1 %v626_v12, %s564_s21  ;;  %208 = vrot.lane.b32.xlu0 %v34_v13, %s564_s21 }
  0x6f   :  { %214 = vrot.lane.b32.xlu1 %v631_v14, %s564_s21  ;;  %212 = vrot.lane.b32.xlu0 %v36_v15, %s564_s21 }
  0x73   :  { %291 = vrot.lane.b32.xlu1 %v256_v19, %s562_s20  ;;  %289 = vrot.lane.b32.xlu0 %v252_v20, %s562_s20 }
  0x77   :  { %295 = vrot.lane.b32.xlu1 %v694_v21, %s562_s20  ;;  %293 = vrot.lane.b32.xlu0 %v697_v22, %s562_s20 }
  0x7b   :  { %299 = vrot.lane.b32.xlu1 %v703_v23, %s562_s20  ;;  %297 = vrot.lane.b32.xlu0 %v705_v24, %s562_s20 }
  0x7f   :  { %303 = vrot.lane.b32.xlu1 %v711_v25, %s562_s20  ;;  %301 = vrot.lane.b32.xlu0 %v713_v26, %s562_s20 }
  0x83   :  { %324 = vrot.lane.b32.xlu1 %v256_v19, %s563_s0  ;;  %322 = vrot.lane.b32.xlu0 %v252_v20, %s563_s0 }
  0x85   :  { %v59_v27 = vpop.permute.xlu1 %58  ;;  %v55_v28 = vpop.permute.xlu0 %54 }
  0x86   :  { %105 = vst.msk [vmem:[%s1204_s1 + $0x1a] sm:$0xff] %vm102_vm0, %v59_v27  ;;  %103 = vst.msk [vmem:[%s1204_s1 + $0x2] sm:$0xff] %vm102_vm0, %v55_v28 }
  0x87   :  { %328 = vrot.lane.b32.xlu1 %v694_v21, %s563_s0  ;;  %326 = vrot.lane.b32.xlu0 %v697_v22, %s563_s0 }
  0x89   :  { %v61_v29 = vpop.permute.xlu1 %60  ;;  %v57_v30 = vpop.permute.xlu0 %56 }
  0x8a   :  { %106 = vst.msk [vmem:[%s1204_s1 + $0x22] sm:$0xff] %vm102_vm0, %v61_v29  ;;  %104 = vst.msk [vmem:[%s1204_s1 + $0xa] sm:$0xff] %vm102_vm0, %v57_v30 }
  0x8b   :  { %332 = vrot.lane.b32.xlu1 %v703_v23, %s563_s0  ;;  %330 = vrot.lane.b32.xlu0 %v705_v24, %s563_s0 }
  0x8d   :  { %v65_v31 = vpop.permute.xlu1 %64  ;;  %v63_v32 = vpop.permute.xlu0 %62 }
  0x8e   :  { %108 = vst.msk [vmem:[%s1204_s1 + $0x3a] sm:$0xff] %vm102_vm0, %v65_v31  ;;  %107 = vst.msk [vmem:[%s1204_s1 + $0x32] sm:$0xff] %vm102_vm0, %v63_v32 }
  0x8f   :  { %336 = vrot.lane.b32.xlu1 %v711_v25, %s563_s0  ;;  %334 = vrot.lane.b32.xlu0 %v713_v26, %s563_s0 }
  0x91   :  { %v69_v34 = vpop.permute.xlu1 %68  ;;  %v67_v35 = vpop.permute.xlu0 %66 }
  0x92   :  { %110 = vst.msk [vmem:[%s1204_s1 + $0x52] sm:$0xff] %vm102_vm0, %v69_v34  ;;  %109 = vst.msk [vmem:[%s1204_s1 + $0x4a] sm:$0xff] %vm102_vm0, %v67_v35 }
  0x93   :  { %357 = vrot.lane.b32.xlu1 %v256_v19, %s564_s21  ;;  %355 = vrot.lane.b32.xlu0 %v252_v20, %s564_s21 }
  0x95   :  { %v73_v38 = vpop.permute.xlu1 %72  ;;  %v71_v39 = vpop.permute.xlu0 %70 }
  0x96   :  { %112 = vst.msk [vmem:[%s1204_s1 + $0x6a] sm:$0xff] %vm102_vm0, %v73_v38  ;;  %111 = vst.msk [vmem:[%s1204_s1 + $0x62] sm:$0xff] %vm102_vm0, %v71_v39 }
  0x97   :  { %430 = vrot.lane.b32.xlu1 %v768_v36, %s562_s20  ;;  %428 = vrot.lane.b32.xlu0 %v771_v37, %s562_s20 }
  0x99   :  { %v77_v42 = vpop.permute.xlu1 %76  ;;  %v75_v43 = vpop.permute.xlu0 %74 }
  0x9a   :  { %114 = vst.msk [vmem:[%s1204_s1 + $0x82] sm:$0xff] %vm102_vm0, %v77_v42  ;;  %113 = vst.msk [vmem:[%s1204_s1 + $0x7a] sm:$0xff] %vm102_vm0, %v75_v43 }
  0x9b   :  { %434 = vrot.lane.b32.xlu1 %v786_v40, %s562_s20  ;;  %432 = vrot.lane.b32.xlu0 %v789_v41, %s562_s20 }
  0x9d   :  { %v81_v46 = vpop.permute.xlu1 %80  ;;  %v79_v47 = vpop.permute.xlu0 %78 }
  0x9e   :  { %116 = vst.msk [vmem:[%s1204_s1 + $0x9a] sm:$0xff] %vm102_vm0, %v81_v46  ;;  %115 = vst.msk [vmem:[%s1204_s1 + $0x92] sm:$0xff] %vm102_vm0, %v79_v47 }
  0x9f   :  { %438 = vrot.lane.b32.xlu1 %v804_v44, %s562_s20  ;;  %436 = vrot.lane.b32.xlu0 %v807_v45, %s562_s20 }
  0xa1   :  { %v85_v50 = vpop.permute.xlu1 %84  ;;  %v83_v51 = vpop.permute.xlu0 %82 }
  0xa2   :  { %118 = vst.msk [vmem:[%s1204_s1 + $0xb2] sm:$0xff] %vm102_vm0, %v85_v50  ;;  %117 = vst.msk [vmem:[%s1204_s1 + $0xaa] sm:$0xff] %vm102_vm0, %v83_v51 }
  0xa3   :  { %442 = vrot.lane.b32.xlu1 %v822_v48, %s562_s20  ;;  %440 = vrot.lane.b32.xlu0 %v825_v49, %s562_s20 }
  0xa5   :  { %v122_v52 = vpop.permute.xlu1 %121  ;;  %v120_v53 = vpop.permute.xlu0 %119 }
  0xa6   :  { %169 = vst.msk [vmem:[%s1204_s1 + $0xa] sm:$0xff] %vm167_vm1, %v122_v52  ;;  %168 = vst.msk [vmem:[%s1204_s1 + $0x2] sm:$0xff] %vm167_vm1, %v120_v53 }
  0xa7   :  { %462 = vrot.lane.b32.xlu1 %v768_v36, %s563_s0  ;;  %460 = vrot.lane.b32.xlu0 %v771_v37, %s563_s0 }
  0xa9   :  { %v126_v54 = vpop.permute.xlu1 %125  ;;  %v124_v55 = vpop.permute.xlu0 %123 }
  0xaa   :  { %171 = vst.msk [vmem:[%s1204_s1 + $0x22] sm:$0xff] %vm167_vm1, %v126_v54  ;;  %170 = vst.msk [vmem:[%s1204_s1 + $0x1a] sm:$0xff] %vm167_vm1, %v124_v55 }
  0xab   :  { %466 = vrot.lane.b32.xlu1 %v786_v40, %s563_s0  ;;  %464 = vrot.lane.b32.xlu0 %v789_v41, %s563_s0 }
  0xad   :  { %v130_v56 = vpop.permute.xlu1 %129  ;;  %v128_v57 = vpop.permute.xlu0 %127 }
  0xae   :  { %173 = vst.msk [vmem:[%s1204_s1 + $0x3a] sm:$0xff] %vm167_vm1, %v130_v56  ;;  %172 = vst.msk [vmem:[%s1204_s1 + $0x32] sm:$0xff] %vm167_vm1, %v128_v57 }
  0xaf   :  { %470 = vrot.lane.b32.xlu1 %v804_v44, %s563_s0  ;;  %468 = vrot.lane.b32.xlu0 %v807_v45, %s563_s0 }
  0xb1   :  { %v134_v58 = vpop.permute.xlu1 %133  ;;  %v132_v59 = vpop.permute.xlu0 %131 }
  0xb2   :  { %175 = vst.msk [vmem:[%s1204_s1 + $0x52] sm:$0xff] %vm167_vm1, %v134_v58  ;;  %174 = vst.msk [vmem:[%s1204_s1 + $0x4a] sm:$0xff] %vm167_vm1, %v132_v59 }
  0xb3   :  { %474 = vrot.lane.b32.xlu1 %v822_v48, %s563_s0  ;;  %472 = vrot.lane.b32.xlu0 %v825_v49, %s563_s0 }
  0xb5   :  { %v138_v60 = vpop.permute.xlu1 %137  ;;  %v136_v61 = vpop.permute.xlu0 %135 }
  0xb6   :  { %177 = vst.msk [vmem:[%s1204_s1 + $0x6a] sm:$0xff] %vm167_vm1, %v138_v60  ;;  %176 = vst.msk [vmem:[%s1204_s1 + $0x62] sm:$0xff] %vm167_vm1, %v136_v61 }
  0xb7   :  { %361 = vrot.lane.b32.xlu1 %v694_v21, %s564_s21  ;;  %359 = vrot.lane.b32.xlu0 %v697_v22, %s564_s21 }
  0xb9   :  { %v142_v62 = vpop.permute.xlu1 %141  ;;  %v140_v63 = vpop.permute.xlu0 %139 }
  0xba   :  { %179 = vst.msk [vmem:[%s1204_s1 + $0x82] sm:$0xff] %vm167_vm1, %v142_v62  ;;  %178 = vst.msk [vmem:[%s1204_s1 + $0x7a] sm:$0xff] %vm167_vm1, %v140_v63 }
  0xbb   :  { %365 = vrot.lane.b32.xlu1 %v703_v23, %s564_s21  ;;  %363 = vrot.lane.b32.xlu0 %v705_v24, %s564_s21 }
  0xbd   :  { %v146_v0 = vpop.permute.xlu1 %145  ;;  %v144_v1 = vpop.permute.xlu0 %143 }
  0xbe   :  { %181 = vst.msk [vmem:[%s1204_s1 + $0x9a] sm:$0xff] %vm167_vm1, %v146_v0  ;;  %180 = vst.msk [vmem:[%s1204_s1 + $0x92] sm:$0xff] %vm167_vm1, %v144_v1 }
  0xbf   :  { %369 = vrot.lane.b32.xlu1 %v711_v25, %s564_s21  ;;  %367 = vrot.lane.b32.xlu0 %v713_v26, %s564_s21 }
  0xc1   :  { %v150_v2 = vpop.permute.xlu1 %149  ;;  %v148_v3 = vpop.permute.xlu0 %147 }
  0xc2   :  { %183 = vst.msk [vmem:[%s1204_s1 + $0xb2] sm:$0xff] %vm167_vm1, %v150_v2  ;;  %182 = vst.msk [vmem:[%s1204_s1 + $0xaa] sm:$0xff] %vm167_vm1, %v148_v3 }
  0xc3   :  { %494 = vrot.lane.b32.xlu1 %v768_v36, %s564_s21  ;;  %492 = vrot.lane.b32.xlu0 %v771_v37, %s564_s21 }
  0xc5   :  { %v187_v4 = vpop.permute.xlu1 %186  ;;  %v185_v5 = vpop.permute.xlu0 %184 }
  0xc6   :  { %234 = vst.msk [vmem:[%s1204_s1 + $0xa] sm:$0xff] %vm232_vm2, %v187_v4  ;;  %233 = vst.msk [vmem:[%s1204_s1 + $0x2] sm:$0xff] %vm232_vm2, %v185_v5 }
  0xc7   :  { %498 = vrot.lane.b32.xlu1 %v786_v40, %s564_s21  ;;  %496 = vrot.lane.b32.xlu0 %v789_v41, %s564_s21 }
  0xc9   :  { %v191_v6 = vpop.permute.xlu1 %190  ;;  %v189_v7 = vpop.permute.xlu0 %188 }
  0xca   :  { %236 = vst.msk [vmem:[%s1204_s1 + $0x22] sm:$0xff] %vm232_vm2, %v191_v6  ;;  %235 = vst.msk [vmem:[%s1204_s1 + $0x1a] sm:$0xff] %vm232_vm2, %v189_v7 }
  0xcb   :  { %502 = vrot.lane.b32.xlu1 %v804_v44, %s564_s21  ;;  %500 = vrot.lane.b32.xlu0 %v807_v45, %s564_s21 }
  0xcd   :  { %v195_v8 = vpop.permute.xlu1 %194  ;;  %v193_v9 = vpop.permute.xlu0 %192 }
  0xce   :  { %238 = vst.msk [vmem:[%s1204_s1 + $0x3a] sm:$0xff] %vm232_vm2, %v195_v8  ;;  %237 = vst.msk [vmem:[%s1204_s1 + $0x32] sm:$0xff] %vm232_vm2, %v193_v9 }
  0xcf   :  { %506 = vrot.lane.b32.xlu1 %v822_v48, %s564_s21  ;;  %504 = vrot.lane.b32.xlu0 %v825_v49, %s564_s21 }
  0xd1   :  { %v199_v10 = vpop.permute.xlu1 %198  ;;  %v197_v11 = vpop.permute.xlu0 %196 }
  0xd2   :  { %240 = vst.msk [vmem:[%s1204_s1 + $0x52] sm:$0xff] %vm232_vm2, %v199_v10  ;;  %239 = vst.msk [vmem:[%s1204_s1 + $0x4a] sm:$0xff] %vm232_vm2, %v197_v11 }
  0xd5   :  { %v203_v12 = vpop.permute.xlu1 %202  ;;  %v201_v13 = vpop.permute.xlu0 %200 }
  0xd6   :  { %242 = vst.msk [vmem:[%s1204_s1 + $0x6a] sm:$0xff] %vm232_vm2, %v203_v12  ;;  %241 = vst.msk [vmem:[%s1204_s1 + $0x62] sm:$0xff] %vm232_vm2, %v201_v13 }
  0xd9   :  { %v207_v14 = vpop.permute.xlu1 %206  ;;  %v205_v15 = vpop.permute.xlu0 %204 }
  0xda   :  { %244 = vst.msk [vmem:[%s1204_s1 + $0x82] sm:$0xff] %vm232_vm2, %v207_v14  ;;  %243 = vst.msk [vmem:[%s1204_s1 + $0x7a] sm:$0xff] %vm232_vm2, %v205_v15 }
  0xdd   :  { %v211_v16 = vpop.permute.xlu1 %210  ;;  %v209_v17 = vpop.permute.xlu0 %208 }
  0xde   :  { %246 = vst.msk [vmem:[%s1204_s1 + $0x9a] sm:$0xff] %vm232_vm2, %v211_v16  ;;  %245 = vst.msk [vmem:[%s1204_s1 + $0x92] sm:$0xff] %vm232_vm2, %v209_v17 }
  0xe1   :  { %v215_v18 = vpop.permute.xlu1 %214  ;;  %v213_v19 = vpop.permute.xlu0 %212 }
  0xe2   :  { %248 = vst.msk [vmem:[%s1204_s1 + $0xb2] sm:$0xff] %vm232_vm2, %v215_v18  ;;  %247 = vst.msk [vmem:[%s1204_s1 + $0xaa] sm:$0xff] %vm232_vm2, %v213_v19 }
  0xe5   :  { %v292_v20 = vpop.permute.xlu1 %291  ;;  %v290_v21 = vpop.permute.xlu0 %289 }
  0xe6   :  { %315 = vst.msk [vmem:[%s1204_s1 + $0x18] sm:$0x3] %vm313_vm3, %v292_v20  ;;  %314 = vst.msk [vmem:[%s1204_s1] sm:$0x3] %vm313_vm3, %v290_v21 }
  0xe9   :  { %v296_v22 = vpop.permute.xlu1 %295  ;;  %v294_v23 = vpop.permute.xlu0 %293 }
  0xea   :  { %317 = vst.msk [vmem:[%s1204_s1 + $0x48] sm:$0x3] %vm313_vm3, %v296_v22  ;;  %316 = vst.msk [vmem:[%s1204_s1 + $0x30] sm:$0x3] %vm313_vm3, %v294_v23 }
  0xed   :  { %v300_v24 = vpop.permute.xlu1 %299  ;;  %v298_v25 = vpop.permute.xlu0 %297 }
  0xee   :  { %319 = vst.msk [vmem:[%s1204_s1 + $0x78] sm:$0x3] %vm313_vm3, %v300_v24  ;;  %318 = vst.msk [vmem:[%s1204_s1 + $0x60] sm:$0x3] %vm313_vm3, %v298_v25 }
  0xf1   :  { %v304_v26 = vpop.permute.xlu1 %303  ;;  %v302_v27 = vpop.permute.xlu0 %301 }
  0xf2   :  { %321 = vst.msk [vmem:[%s1204_s1 + $0xa8] sm:$0x3] %vm313_vm3, %v304_v26  ;;  %320 = vst.msk [vmem:[%s1204_s1 + $0x90] sm:$0x3] %vm313_vm3, %v302_v27 }
  0xf5   :  { %v325_v28 = vpop.permute.xlu1 %324  ;;  %v323_v29 = vpop.permute.xlu0 %322 }
  0xf6   :  { %348 = vst.msk [vmem:[%s1204_s1 + $0x18] sm:$0x3] %vm346_vm4, %v325_v28  ;;  %347 = vst.msk [vmem:[%s1204_s1] sm:$0x3] %vm346_vm4, %v323_v29 }
  0xf9   :  { %v329_v30 = vpop.permute.xlu1 %328  ;;  %v327_v31 = vpop.permute.xlu0 %326 }
  0xfa   :  { %350 = vst.msk [vmem:[%s1204_s1 + $0x48] sm:$0x3] %vm346_vm4, %v329_v30  ;;  %349 = vst.msk [vmem:[%s1204_s1 + $0x30] sm:$0x3] %vm346_vm4, %v327_v31 }
  0xfd   :  { %v333_v32 = vpop.permute.xlu1 %332  ;;  %v331_v33 = vpop.permute.xlu0 %330 }
  0xfe   :  { %352 = vst.msk [vmem:[%s1204_s1 + $0x78] sm:$0x3] %vm346_vm4, %v333_v32  ;;  %351 = vst.msk [vmem:[%s1204_s1 + $0x60] sm:$0x3] %vm346_vm4, %v331_v33 }
 0x101   :  { %v337_v34 = vpop.permute.xlu1 %336  ;;  %v335_v35 = vpop.permute.xlu0 %334 }
 0x102   :  { %354 = vst.msk [vmem:[%s1204_s1 + $0xa8] sm:$0x3] %vm346_vm4, %v337_v34  ;;  %353 = vst.msk [vmem:[%s1204_s1 + $0x90] sm:$0x3] %vm346_vm4, %v335_v35 }
 0x105   :  { %v358_v36 = vpop.permute.xlu1 %357  ;;  %v356_v37 = vpop.permute.xlu0 %355 }
 0x106   :  { %381 = vst.msk [vmem:[%s1204_s1 + $0x18] sm:$0x3] %vm379_vm5, %v358_v36  ;;  %380 = vst.msk [vmem:[%s1204_s1] sm:$0x3] %vm379_vm5, %v356_v37 }
 0x109   :  { %v431_v38 = vpop.permute.xlu1 %430  ;;  %v429_v39 = vpop.permute.xlu0 %428 }
 0x10a   :  { %453 = vst.msk [vmem:[%s1204_s1 + $0x2a] sm:$0x3] %vm313_vm3, %v431_v38  ;;  %452 = vst.msk [vmem:[%s1204_s1 + $0x12] sm:$0x3] %vm313_vm3, %v429_v39 }
 0x10d   :  { %v435_v40 = vpop.permute.xlu1 %434  ;;  %v433_v41 = vpop.permute.xlu0 %432 }
 0x10e   :  { %455 = vst.msk [vmem:[%s1204_s1 + $0x5a] sm:$0x3] %vm313_vm3, %v435_v40  ;;  %454 = vst.msk [vmem:[%s1204_s1 + $0x42] sm:$0x3] %vm313_vm3, %v433_v41 }
 0x111   :  { %v439_v42 = vpop.permute.xlu1 %438  ;;  %v437_v43 = vpop.permute.xlu0 %436 }
 0x112   :  { %457 = vst.msk [vmem:[%s1204_s1 + $0x8a] sm:$0x3] %vm313_vm3, %v439_v42  ;;  %456 = vst.msk [vmem:[%s1204_s1 + $0x72] sm:$0x3] %vm313_vm3, %v437_v43 }
 0x115   :  { %v443_v44 = vpop.permute.xlu1 %442  ;;  %v441_v45 = vpop.permute.xlu0 %440 }
 0x116   :  { %459 = vst.msk [vmem:[%s1204_s1 + $0xba] sm:$0x3] %vm313_vm3, %v443_v44  ;;  %458 = vst.msk [vmem:[%s1204_s1 + $0xa2] sm:$0x3] %vm313_vm3, %v441_v45 }
 0x119   :  { %v463_v46 = vpop.permute.xlu1 %462  ;;  %v461_v47 = vpop.permute.xlu0 %460 }
 0x11a   :  { %485 = vst.msk [vmem:[%s1204_s1 + $0x2a] sm:$0x3] %vm346_vm4, %v463_v46  ;;  %484 = vst.msk [vmem:[%s1204_s1 + $0x12] sm:$0x3] %vm346_vm4, %v461_v47 }
 0x11d   :  { %v467_v48 = vpop.permute.xlu1 %466  ;;  %v465_v49 = vpop.permute.xlu0 %464 }
 0x11e   :  { %487 = vst.msk [vmem:[%s1204_s1 + $0x5a] sm:$0x3] %vm346_vm4, %v467_v48  ;;  %486 = vst.msk [vmem:[%s1204_s1 + $0x42] sm:$0x3] %vm346_vm4, %v465_v49 }
 0x121   :  { %v471_v50 = vpop.permute.xlu1 %470  ;;  %v469_v51 = vpop.permute.xlu0 %468 }
 0x122   :  { %489 = vst.msk [vmem:[%s1204_s1 + $0x8a] sm:$0x3] %vm346_vm4, %v471_v50  ;;  %488 = vst.msk [vmem:[%s1204_s1 + $0x72] sm:$0x3] %vm346_vm4, %v469_v51 }
 0x125   :  { %v475_v52 = vpop.permute.xlu1 %474  ;;  %v473_v53 = vpop.permute.xlu0 %472 }
 0x126   :  { %491 = vst.msk [vmem:[%s1204_s1 + $0xba] sm:$0x3] %vm346_vm4, %v475_v52  ;;  %490 = vst.msk [vmem:[%s1204_s1 + $0xa2] sm:$0x3] %vm346_vm4, %v473_v53 }
 0x129   :  { %v362_v54 = vpop.permute.xlu1 %361  ;;  %v360_v55 = vpop.permute.xlu0 %359 }
 0x12a   :  { %383 = vst.msk [vmem:[%s1204_s1 + $0x48] sm:$0x3] %vm379_vm5, %v362_v54  ;;  %382 = vst.msk [vmem:[%s1204_s1 + $0x30] sm:$0x3] %vm379_vm5, %v360_v55 }
 0x12d   :  { %v366_v56 = vpop.permute.xlu1 %365  ;;  %v364_v57 = vpop.permute.xlu0 %363 }
 0x12e   :  { %385 = vst.msk [vmem:[%s1204_s1 + $0x78] sm:$0x3] %vm379_vm5, %v366_v56  ;;  %384 = vst.msk [vmem:[%s1204_s1 + $0x60] sm:$0x3] %vm379_vm5, %v364_v57 }
 0x131   :  { %v370_v58 = vpop.permute.xlu1 %369  ;;  %v368_v59 = vpop.permute.xlu0 %367 }
 0x132   :  { %387 = vst.msk [vmem:[%s1204_s1 + $0xa8] sm:$0x3] %vm379_vm5, %v370_v58  ;;  %386 = vst.msk [vmem:[%s1204_s1 + $0x90] sm:$0x3] %vm379_vm5, %v368_v59 }
 0x135   :  { %v495_v60 = vpop.permute.xlu1 %494  ;;  %v493_v61 = vpop.permute.xlu0 %492 }
 0x136   :  { %517 = vst.msk [vmem:[%s1204_s1 + $0x2a] sm:$0x3] %vm379_vm5, %v495_v60  ;;  %516 = vst.msk [vmem:[%s1204_s1 + $0x12] sm:$0x3] %vm379_vm5, %v493_v61 }
 0x139   :  { %v499_v62 = vpop.permute.xlu1 %498  ;;  %v497_v63 = vpop.permute.xlu0 %496 }
 0x13a   :  { %519 = vst.msk [vmem:[%s1204_s1 + $0x5a] sm:$0x3] %vm379_vm5, %v499_v62  ;;  %518 = vst.msk [vmem:[%s1204_s1 + $0x42] sm:$0x3] %vm379_vm5, %v497_v63 }
 0x13d   :  { %v503_v0 = vpop.permute.xlu1 %502  ;;  %v501_v1 = vpop.permute.xlu0 %500 }
 0x13e   :  { %521 = vst.msk [vmem:[%s1204_s1 + $0x8a] sm:$0x3] %vm379_vm5, %v503_v0  ;;  %520 = vst.msk [vmem:[%s1204_s1 + $0x72] sm:$0x3] %vm379_vm5, %v501_v1 }
 0x141   :  { %v507_v2 = vpop.permute.xlu1 %506  ;;  %v505_v3 = vpop.permute.xlu0 %504 }
 0x142   :  { %523 = vst.msk [vmem:[%s1204_s1 + $0xba] sm:$0x3] %vm379_vm5, %v507_v2  ;;  %522 = vst.msk [vmem:[%s1204_s1 + $0xa2] sm:$0x3] %vm379_vm5, %v505_v3 }
 0x143   :  { %528 = vsyncpa [#allocation3], 1 }

</bundles_post_ra>
